<compile_context>
chip_gen: v7x
topology: tpu7x:2x2x1
jax: 0.10.0
libtpu: 0.0.40
codegen_flags: <defaults>
</compile_context>

<pallas_src>
import functools

import jax
import jax.numpy as jnp
from jax.experimental import pallas as pl
from jax.experimental.pallas import tpu as pltpu

_LANE = 128  # lane width (last-dim granularity for lane-dense stores / MXU N tiles)


def _round_up(x, m):
    return ((x + m - 1) // m) * m


def _activation(name):
    if name == "relu":
        return lambda x: jnp.maximum(x, 0.0)
    if name == "tanh":
        return jnp.tanh
    raise ValueError(f"unsupported activation: {name}")


def _choose_batch_tile(batch, block_b, sublane):
    """Batch tile: multiple of the dtype sublane, <= block_b, and (best effort) an even
    number of grid steps so the 'parallel' batch axis splits evenly across v7x's 2 TCs
    (no effect on v5e/v6e: single TensorCore)."""
    tb = min(_round_up(batch, sublane), _round_up(block_b, sublane))
    steps = -(-batch // tb)
    if steps % 2 == 1 and batch > sublane:
        tb_even = _round_up(-(-batch // (steps + 1)), sublane)
        if tb_even >= sublane and (-(-batch // tb_even)) % 2 == 0:
            tb = tb_even
    return tb


def _mlp_kernel(*refs, n_layers, activation):
    """Fused MLP forward over one batch tile.

    refs layout:
      refs[0]                      : x_ref   [TB, din_pad]        (compute dtype)
      refs[1 + 2*l], refs[2 + 2*l] : (W_l [din_pad, dout_pad], b_l [1, dout_pad])
      refs[-1]                     : out_ref [TB, dout_pad_last]  (compute dtype)
    Feature dims pre-padded (128 downstream, sublane-only for the first K dim) ->
    lane-dense stores, full MXU tiles.  Layer loop is Python-unrolled.
    """
    act = _activation(activation)
    x_ref = refs[0]
    out_ref = refs[-1]
    param_refs = refs[1:-1]

    compute_dtype = param_refs[0].dtype  # f32 or bf16 (x already cast in the wrapper)
    h = x_ref[...]
    for l in range(n_layers):
        w = param_refs[2 * l][...]
        b = param_refs[2 * l + 1][...]
        # MXU matmul with f32 accumulation; bias add / activation in f32 (VPU/EUP).
        h = jnp.dot(h, w, preferred_element_type=jnp.float32) + b.astype(jnp.float32)
        if l < n_layers - 1:  # no activation on the output layer
            h = act(h).astype(compute_dtype)
    out_ref[...] = h.astype(out_ref.dtype)


def init_mlp_params(key, input_dim, output_dim, hidden_size, hidden_layers,
                    dtype=jnp.float32):
    """Deterministic parameter init. Weights stored as [in, out]; biases [1, out]."""
    dims = [input_dim] + [hidden_size] * hidden_layers + [output_dim]
    params = []
    for din, dout in zip(dims[:-1], dims[1:]):
        key, kw, kb = jax.random.split(key, 3)
        scale = 1.0 / jnp.sqrt(jnp.array(din, dtype=jnp.float32))
        w = (jax.random.uniform(kw, (din, dout), dtype=jnp.float32,
                                minval=-1.0, maxval=1.0) * scale).astype(dtype)
        b = (jax.random.uniform(kb, (1, dout), dtype=jnp.float32,
                                minval=-1.0, maxval=1.0) * scale).astype(dtype)
        params.append((w, b))
    return params


@functools.partial(jax.jit, static_argnames=("hidden_layers", "activation", "block_b",
                                             "single_buffer_params"))
def _mlp_forward_impl(x, params_flat, *, hidden_layers, activation, block_b,
                      single_buffer_params):
    B, input_dim = x.shape
    n_layers = hidden_layers + 1
    assert len(params_flat) == 2 * n_layers

    compute_dtype = params_flat[0].dtype
    itemsize = jnp.dtype(compute_dtype).itemsize
    sublane = (8 * 4) // itemsize  # 8 for f32, 16 for bf16

    # Per-layer dims from the weight shapes (W stored as [in, out]).
    dims = [input_dim] + [params_flat[2 * l].shape[1] for l in range(n_layers)]
    output_dim = dims[-1]

    # Padding: first-layer K dim only to the sublane (block == full array dim, legal);
    # all downstream feature dims to 128 so stores are lane-dense / MXU tiles are full.
    dims_p = [_round_up(input_dim, sublane)] + [_round_up(d, _LANE) for d in dims[1:]]

    tb = _choose_batch_tile(B, block_b, sublane)
    B_pad = _round_up(B, tb)

    # Cast x to the weights' dtype here (fused with the pad by XLA) so the streamed
    # tiles are already in compute dtype; zero padding is exact (relu(0)=tanh(0)=0).
    x_p = jnp.pad(x.astype(compute_dtype),
                  ((0, B_pad - B), (0, dims_p[0] - input_dim)))

    padded_params = []
    for l in range(n_layers):
        w, b = params_flat[2 * l], params_flat[2 * l + 1]
        din, dout = w.shape
        padded_params.append(
            jnp.pad(w, ((0, dims_p[l] - din), (0, dims_p[l + 1] - dout))))
        padded_params.append(jnp.pad(b, ((0, 0), (0, dims_p[l + 1] - dout))))

    grid = (B_pad // tb,)

    def resident_spec(shape):
        # Constant index_map -> fetched once, VMEM-resident across grid steps.
        idx = lambda i: (0,) * len(shape)
        if single_buffer_params:
            # Default double-buffering of a never-changing block is pure VMEM waste.
            return pl.BlockSpec(shape, idx, pipeline_mode=pl.Buffered(1))
        return pl.BlockSpec(shape, idx)

    in_specs = [pl.BlockSpec((tb, dims_p[0]), lambda i: (i, 0))]  # x streams per tile
    for l in range(n_layers):
        in_specs.append(resident_spec((dims_p[l], dims_p[l + 1])))
        in_specs.append(resident_spec((1, dims_p[l + 1])))
    out_spec = pl.BlockSpec((tb, dims_p[-1]), lambda i: (i, 0))

    # Advisory cost estimate so XLA can overlap the surrounding pad/slice ops.
    flops = 2 * B_pad * sum(dims_p[l] * dims_p[l + 1] for l in range(n_layers))
    transcendentals = (B_pad * sum(dims_p[1:-1])) if activation == "tanh" else 0
    param_bytes = sum(int(p.size) * itemsize for p in padded_params)
    bytes_accessed = (B_pad * dims_p[0] * itemsize + param_bytes
                      + B_pad * dims_p[-1] * itemsize)

    # Generation-aware VMEM budget: (1x or 2x) resident params + double-buffered
    # x/out tiles, with margin, clamped below the per-core capacity minus headroom
    # (~54 MiB of 64 on v7x; ~108 MiB of 128 on v5e/v6e).
    vmem_cap = 64 * 1024 * 1024
    try:
        vmem_cap = int(pltpu.get_tpu_info().vmem_capacity_bytes)
    except Exception:
        pass  # fall back to the most conservative (v7x) capacity
    param_mult = 1 if single_buffer_params else 2
    tile_bytes = 2 * tb * (dims_p[0] + dims_p[-1]) * itemsize  # double-buffered x/out
    need = param_mult * param_bytes + tile_bytes
    vmem_ceiling = min(int(0.85 * vmem_cap), vmem_cap - (8 << 20))
    vmem_limit = max(16 << 20, min(vmem_ceiling, int(1.3 * need) + (4 << 20)))

    kernel = functools.partial(_mlp_kernel, n_layers=n_layers, activation=activation)

    out_p = pl.pallas_call(
        kernel,
        out_shape=jax.ShapeDtypeStruct((B_pad, dims_p[-1]), compute_dtype),
        grid_spec=pltpu.PrefetchScalarGridSpec(
            num_scalar_prefetch=0,
            grid=grid,
            in_specs=in_specs,
            out_specs=out_spec),
        compiler_params=pltpu.CompilerParams(
            dimension_semantics=("parallel",),  # batch tiles shard across v7x's 2 TCs
            vmem_limit_bytes=vmem_limit),
        cost_estimate=pl.CostEstimate(
            flops=int(flops),
            transcendentals=int(transcendentals),
            bytes_accessed=int(bytes_accessed)),
    )(x_p, *padded_params)

    # Strip batch / lane padding outside the kernel (lane-dense store inside); return
    # in the caller's input dtype (cast fuses with the slice when dtypes differ).
    out = out_p[:B, :output_dim]
    return out if out.dtype == x.dtype else out.astype(x.dtype)


def mlp_forward(x, params_flat, *, hidden_layers, activation, block_b=512):
    """x: [B, input_dim]; params_flat: flat tuple (W0, b0, W1, b1, ...)."""
    kwargs = dict(hidden_layers=hidden_layers, activation=activation, block_b=block_b)
    try:
        return _mlp_forward_impl(x, params_flat, single_buffer_params=True, **kwargs)
    except Exception:
        # TODO(synk): pl.Buffered(1) (single-buffered resident weights) unsupported on
        # this jax build; fall back to default double-buffered params (2x param VMEM).
        return _mlp_forward_impl(x, params_flat, single_buffer_params=False, **kwargs)


def mlp_reference(x, params_flat, hidden_layers, activation):
    act = _activation(activation)
    n_layers = hidden_layers + 1
    h = x.astype(jnp.float32)
    for l in range(n_layers):
        w = params_flat[2 * l].astype(jnp.float32)
        b = params_flat[2 * l + 1].astype(jnp.float32)
        h = h @ w + b
        if l < n_layers - 1:
            h = act(h)
    return h


if __name__ == "__main__":
    # Small, module-consistent shapes.
    batch = 4
    input_dim = 8
    output_dim = 4
    hidden_size = 32
    hidden_layers = 2
    activation = "relu"

    key = jax.random.PRNGKey(0)
    key, kx = jax.random.split(key)
    x = jax.random.normal(kx, (batch, input_dim), dtype=jnp.float32)

    params = init_mlp_params(key, input_dim, output_dim, hidden_size, hidden_layers)
    params_flat = tuple(p for pair in params for p in pair)

    # ---- f32 path (exact-ish check) ----
    out = mlp_forward(x, params_flat, hidden_layers=hidden_layers,
                      activation=activation)
    out = jax.block_until_ready(out)
    ref = mlp_reference(x, params_flat, hidden_layers, activation)
    assert out.shape == (batch, output_dim), out.shape
    assert jnp.allclose(out, ref, atol=1e-4, rtol=1e-4), \
        f"f32 max abs err {jnp.max(jnp.abs(out - ref))}"

    # ---- bf16 weights/activations (recommended perf config on v5e/v6e/v7x) ----
    x_bf = x.astype(jnp.bfloat16)
    params_bf = tuple(p.astype(jnp.bfloat16) for p in params_flat)
    out_bf = mlp_forward(x_bf, params_bf, hidden_layers=hidden_layers,
                         activation=activation)
    out_bf = jax.block_until_ready(out_bf)
    assert out_bf.shape == (batch, output_dim), out_bf.shape
    assert jnp.allclose(out_bf.astype(jnp.float32), ref, atol=1e-1, rtol=1e-1), \
        f"bf16 max abs err {jnp.max(jnp.abs(out_bf.astype(jnp.float32) - ref))}"

    # ---- larger batch: 2 even grid steps (streams x/out, balances v7x's 2 TCs) ----
    x_big = jax.random.normal(jax.random.PRNGKey(1), (1000, input_dim),
                              dtype=jnp.float32)
    out_big = mlp_forward(x_big, params_flat, hidden_layers=hidden_layers,
                          activation=activation)
    out_big = jax.block_until_ready(out_big)
    ref_big = mlp_reference(x_big, params_flat, hidden_layers, activation)
    assert out_big.shape == (1000, output_dim), out_big.shape
    assert jnp.allclose(out_big, ref_big, atol=1e-4, rtol=1e-4), \
        f"big-batch max abs err {jnp.max(jnp.abs(out_big - ref_big))}"

    # ---- policy/critic-like config: state_dim=3 (sublane-only K padding), tanh ----
    x_s = jax.random.normal(jax.random.PRNGKey(2), (2, 3), dtype=jnp.float32)
    params_s = init_mlp_params(jax.random.PRNGKey(3), 3, 1, 64, 3)
    params_s_flat = tuple(p for pair in params_s for p in pair)
    out_s = mlp_forward(x_s, params_s_flat, hidden_layers=3, activation="tanh")
    out_s = jax.block_until_ready(out_s)
    ref_s = mlp_reference(x_s, params_s_flat, 3, "tanh")
    assert out_s.shape == (2, 1), out_s.shape
    assert jnp.allclose(out_s, ref_s, atol=2e-3, rtol=2e-3), \
        f"tanh max abs err {jnp.max(jnp.abs(out_s - ref_s))}"

    print("KERNEL_OK")
</pallas_src>

<mosaic_0001>
module attributes {stable_mosaic.version = 11 : i64} {
  func.func @_mlp_kernel(%arg0: i32, %arg1: memref<8x8xf32, #tpu.memory_space<vmem>>, %arg2: memref<8x128xf32, #tpu.memory_space<vmem>>, %arg3: memref<1x128xf32, #tpu.memory_space<vmem>>, %arg4: memref<128x128xf32, #tpu.memory_space<vmem>>, %arg5: memref<1x128xf32, #tpu.memory_space<vmem>>, %arg6: memref<128x128xf32, #tpu.memory_space<vmem>>, %arg7: memref<1x128xf32, #tpu.memory_space<vmem>>, %arg8: memref<8x128xf32, #tpu.memory_space<vmem>>) attributes {dimension_semantics = [#tpu.dimension_semantics<parallel>], iteration_bounds = array<i64: 1>, scalar_prefetch = 0 : i64, scratch_operands = 0 : i64, tpu.core_type = #tpu.core_type<tc>, window_params = [{transform_indices = @transform_0, window_bounds = array<i64: 8, 8>}, {pipeline_mode = #tpu.pipeline_mode<synchronous>, transform_indices = @transform_1, window_bounds = array<i64: 8, 128>}, {pipeline_mode = #tpu.pipeline_mode<synchronous>, transform_indices = @transform_2, window_bounds = array<i64: 1, 128>}, {pipeline_mode = #tpu.pipeline_mode<synchronous>, transform_indices = @transform_3, window_bounds = array<i64: 128, 128>}, {pipeline_mode = #tpu.pipeline_mode<synchronous>, transform_indices = @transform_4, window_bounds = array<i64: 1, 128>}, {pipeline_mode = #tpu.pipeline_mode<synchronous>, transform_indices = @transform_5, window_bounds = array<i64: 128, 128>}, {pipeline_mode = #tpu.pipeline_mode<synchronous>, transform_indices = @transform_6, window_bounds = array<i64: 1, 128>}, {transform_indices = @transform_7, window_bounds = array<i64: 8, 128>}]} {
    %c0 = arith.constant 0 : index
    %c0_0 = arith.constant 0 : index
    %0 = vector.load %arg1[%c0, %c0_0] : memref<8x8xf32, #tpu.memory_space<vmem>>, vector<8x8xf32>
    %c0_1 = arith.constant 0 : index
    %c0_2 = arith.constant 0 : index
    %1 = vector.load %arg2[%c0_1, %c0_2] : memref<8x128xf32, #tpu.memory_space<vmem>>, vector<8x128xf32>
    %c0_3 = arith.constant 0 : index
    %c0_4 = arith.constant 0 : index
    %2 = vector.load %arg3[%c0_3, %c0_4] : memref<1x128xf32, #tpu.memory_space<vmem>>, vector<1x128xf32>
    %cst = arith.constant dense<0.000000e+00> : vector<8x128xf32>
    %3 = tpu.matmul %0, %1, %cst {dimension_numbers = #tpu.dot_dimension_numbers<[1], [0], [0], [1], [0, 0, 1, 1], [], []>} : vector<8x8xf32>, vector<8x128xf32>, vector<8x128xf32> -> vector<8x128xf32>
    %4 = vector.broadcast %2 : vector<1x128xf32> to vector<8x128xf32>
    %5 = arith.addf %3, %4 : vector<8x128xf32>
    %cst_5 = arith.constant 0.000000e+00 : f32
    %6 = vector.broadcast %cst_5 : f32 to vector<8x128xf32>
    %7 = arith.maximumf %5, %6 : vector<8x128xf32>
    %c0_6 = arith.constant 0 : index
    %c0_7 = arith.constant 0 : index
    %8 = vector.load %arg4[%c0_6, %c0_7] : memref<128x128xf32, #tpu.memory_space<vmem>>, vector<128x128xf32>
    %c0_8 = arith.constant 0 : index
    %c0_9 = arith.constant 0 : index
    %9 = vector.load %arg5[%c0_8, %c0_9] : memref<1x128xf32, #tpu.memory_space<vmem>>, vector<1x128xf32>
    %cst_10 = arith.constant dense<0.000000e+00> : vector<8x128xf32>
    %10 = tpu.matmul %7, %8, %cst_10 {dimension_numbers = #tpu.dot_dimension_numbers<[1], [0], [0], [1], [0, 0, 1, 1], [], []>} : vector<8x128xf32>, vector<128x128xf32>, vector<8x128xf32> -> vector<8x128xf32>
    %11 = vector.broadcast %9 : vector<1x128xf32> to vector<8x128xf32>
    %12 = arith.addf %10, %11 : vector<8x128xf32>
    %cst_11 = arith.constant 0.000000e+00 : f32
    %13 = vector.broadcast %cst_11 : f32 to vector<8x128xf32>
    %14 = arith.maximumf %12, %13 : vector<8x128xf32>
    %c0_12 = arith.constant 0 : index
    %c0_13 = arith.constant 0 : index
    %15 = vector.load %arg6[%c0_12, %c0_13] : memref<128x128xf32, #tpu.memory_space<vmem>>, vector<128x128xf32>
    %c0_14 = arith.constant 0 : index
    %c0_15 = arith.constant 0 : index
    %16 = vector.load %arg7[%c0_14, %c0_15] : memref<1x128xf32, #tpu.memory_space<vmem>>, vector<1x128xf32>
    %cst_16 = arith.constant dense<0.000000e+00> : vector<8x128xf32>
    %17 = tpu.matmul %14, %15, %cst_16 {dimension_numbers = #tpu.dot_dimension_numbers<[1], [0], [0], [1], [0, 0, 1, 1], [], []>} : vector<8x128xf32>, vector<128x128xf32>, vector<8x128xf32> -> vector<8x128xf32>
    %18 = vector.broadcast %16 : vector<1x128xf32> to vector<8x128xf32>
    %19 = arith.addf %17, %18 : vector<8x128xf32>
    %c0_17 = arith.constant 0 : index
    %c0_18 = arith.constant 0 : index
    %20 = vector.load %arg8[%c0_17, %c0_18] : memref<8x128xf32, #tpu.memory_space<vmem>>, vector<8x128xf32>
    tpu.vector_store %arg8[%c0_17, %c0_18], %19 {strides = array<i32>} : memref<8x128xf32, #tpu.memory_space<vmem>>, vector<8x128xf32>,
    return
  }
  func.func @transform_0(%arg0: i32) -> (i32, i32) {
    %c0_i32 = arith.constant 0 : i32
    %c0_i32_0 = arith.constant 0 : i32
    return %arg0, %c0_i32 : i32, i32
  }
  func.func @transform_1(%arg0: i32) -> (i32, i32) {
    %c0_i32 = arith.constant 0 : i32
    %c0_i32_0 = arith.constant 0 : i32
    %c0_i32_1 = arith.constant 0 : i32
    return %c0_i32, %c0_i32_0 : i32, i32
  }
  func.func @transform_2(%arg0: i32) -> (i32, i32) {
    %c0_i32 = arith.constant 0 : i32
    %c0_i32_0 = arith.constant 0 : i32
    %c0_i32_1 = arith.constant 0 : i32
    return %c0_i32, %c0_i32_0 : i32, i32
  }
  func.func @transform_3(%arg0: i32) -> (i32, i32) {
    %c0_i32 = arith.constant 0 : i32
    %c0_i32_0 = arith.constant 0 : i32
    %c0_i32_1 = arith.constant 0 : i32
    return %c0_i32, %c0_i32_0 : i32, i32
  }
  func.func @transform_4(%arg0: i32) -> (i32, i32) {
    %c0_i32 = arith.constant 0 : i32
    %c0_i32_0 = arith.constant 0 : i32
    %c0_i32_1 = arith.constant 0 : i32
    return %c0_i32, %c0_i32_0 : i32, i32
  }
  func.func @transform_5(%arg0: i32) -> (i32, i32) {
    %c0_i32 = arith.constant 0 : i32
    %c0_i32_0 = arith.constant 0 : i32
    %c0_i32_1 = arith.constant 0 : i32
    return %c0_i32, %c0_i32_0 : i32, i32
  }
  func.func @transform_6(%arg0: i32) -> (i32, i32) {
    %c0_i32 = arith.constant 0 : i32
    %c0_i32_0 = arith.constant 0 : i32
    %c0_i32_1 = arith.constant 0 : i32
    return %c0_i32, %c0_i32_0 : i32, i32
  }
  func.func @transform_7(%arg0: i32) -> (i32, i32) {
    %c0_i32 = arith.constant 0 : i32
    %c0_i32_0 = arith.constant 0 : i32
    return %arg0, %c0_i32 : i32, i32
  }
}

module attributes {stable_mosaic.version = 11 : i64} {
  func.func @_mlp_kernel(%arg0: i32, %arg1: memref<8x8xf32, #tpu.memory_space<vmem>>, %arg2: memref<8x128xf32, #tpu.memory_space<vmem>>, %arg3: memref<1x128xf32, #tpu.memory_space<vmem>>, %arg4: memref<128x128xf32, #tpu.memory_space<vmem>>, %arg5: memref<1x128xf32, #tpu.memory_space<vmem>>, %arg6: memref<128x128xf32, #tpu.memory_space<vmem>>, %arg7: memref<1x128xf32, #tpu.memory_space<vmem>>, %arg8: memref<8x128xf32, #tpu.memory_space<vmem>>) attributes {dimension_semantics = [#tpu.dimension_semantics<parallel>], iteration_bounds = array<i64: 1>, scalar_prefetch = 0 : i64, scratch_operands = 0 : i64, tpu.core_type = #tpu.core_type<tc>, window_params = [{transform_indices = @transform_0, window_bounds = array<i64: 8, 8>}, {pipeline_mode = #tpu.pipeline_mode<synchronous>, transform_indices = @transform_1, window_bounds = array<i64: 8, 128>}, {pipeline_mode = #tpu.pipeline_mode<synchronous>, transform_indices = @transform_2, window_bounds = array<i64: 1, 128>}, {pipeline_mode = #tpu.pipeline_mode<synchronous>, transform_indices = @transform_3, window_bounds = array<i64: 128, 128>}, {pipeline_mode = #tpu.pipeline_mode<synchronous>, transform_indices = @transform_4, window_bounds = array<i64: 1, 128>}, {pipeline_mode = #tpu.pipeline_mode<synchronous>, transform_indices = @transform_5, window_bounds = array<i64: 128, 128>}, {pipeline_mode = #tpu.pipeline_mode<synchronous>, transform_indices = @transform_6, window_bounds = array<i64: 1, 128>}, {transform_indices = @transform_7, window_bounds = array<i64: 8, 128>}]} {
    %c0 = arith.constant 0 : index
    %c0_0 = arith.constant 0 : index
    %0 = vector.load %arg1[%c0, %c0_0] : memref<8x8xf32, #tpu.memory_space<vmem>>, vector<8x8xf32>
    %c0_1 = arith.constant 0 : index
    %c0_2 = arith.constant 0 : index
    %1 = vector.load %arg2[%c0_1, %c0_2] : memref<8x128xf32, #tpu.memory_space<vmem>>, vector<8x128xf32>
    %c0_3 = arith.constant 0 : index
    %c0_4 = arith.constant 0 : index
    %2 = vector.load %arg3[%c0_3, %c0_4] : memref<1x128xf32, #tpu.memory_space<vmem>>, vector<1x128xf32>
    %cst = arith.constant dense<0.000000e+00> : vector<8x128xf32>
    %3 = tpu.matmul %0, %1, %cst {dimension_numbers = #tpu.dot_dimension_numbers<[1], [0], [0], [1], [0, 0, 1, 1], [], []>} : vector<8x8xf32>, vector<8x128xf32>, vector<8x128xf32> -> vector<8x128xf32>
    %4 = vector.broadcast %2 : vector<1x128xf32> to vector<8x128xf32>
    %5 = arith.addf %3, %4 : vector<8x128xf32>
    %cst_5 = arith.constant 0.000000e+00 : f32
    %6 = vector.broadcast %cst_5 : f32 to vector<8x128xf32>
    %7 = arith.maximumf %5, %6 : vector<8x128xf32>
    %c0_6 = arith.constant 0 : index
    %c0_7 = arith.constant 0 : index
    %8 = vector.load %arg4[%c0_6, %c0_7] : memref<128x128xf32, #tpu.memory_space<vmem>>, vector<128x128xf32>
    %c0_8 = arith.constant 0 : index
    %c0_9 = arith.constant 0 : index
    %9 = vector.load %arg5[%c0_8, %c0_9] : memref<1x128xf32, #tpu.memory_space<vmem>>, vector<1x128xf32>
    %cst_10 = arith.constant dense<0.000000e+00> : vector<8x128xf32>
    %10 = tpu.matmul %7, %8, %cst_10 {dimension_numbers = #tpu.dot_dimension_numbers<[1], [0], [0], [1], [0, 0, 1, 1], [], []>} : vector<8x128xf32>, vector<128x128xf32>, vector<8x128xf32> -> vector<8x128xf32>
    %11 = vector.broadcast %9 : vector<1x128xf32> to vector<8x128xf32>
    %12 = arith.addf %10, %11 : vector<8x128xf32>
    %cst_11 = arith.constant 0.000000e+00 : f32
    %13 = vector.broadcast %cst_11 : f32 to vector<8x128xf32>
    %14 = arith.maximumf %12, %13 : vector<8x128xf32>
    %c0_12 = arith.constant 0 : index
    %c0_13 = arith.constant 0 : index
    %15 = vector.load %arg6[%c0_12, %c0_13] : memref<128x128xf32, #tpu.memory_space<vmem>>, vector<128x128xf32>
    %c0_14 = arith.constant 0 : index
    %c0_15 = arith.constant 0 : index
    %16 = vector.load %arg7[%c0_14, %c0_15] : memref<1x128xf32, #tpu.memory_space<vmem>>, vector<1x128xf32>
    %cst_16 = arith.constant dense<0.000000e+00> : vector<8x128xf32>
    %17 = tpu.matmul %14, %15, %cst_16 {dimension_numbers = #tpu.dot_dimension_numbers<[1], [0], [0], [1], [0, 0, 1, 1], [], []>} : vector<8x128xf32>, vector<128x128xf32>, vector<8x128xf32> -> vector<8x128xf32>
    %18 = vector.broadcast %16 : vector<1x128xf32> to vector<8x128xf32>
    %19 = arith.addf %17, %18 : vector<8x128xf32>
    %c0_17 = arith.constant 0 : index
    %c0_18 = arith.constant 0 : index
    %20 = vector.load %arg8[%c0_17, %c0_18] : memref<8x128xf32, #tpu.memory_space<vmem>>, vector<8x128xf32>
    tpu.vector_store %arg8[%c0_17, %c0_18], %19 {strides = array<i32>} : memref<8x128xf32, #tpu.memory_space<vmem>>, vector<8x128xf32>,
    return
  }
  func.func @transform_0(%arg0: i32) -> (i32, i32) {
    %c0_i32 = arith.constant 0 : i32
    %c0_i32_0 = arith.constant 0 : i32
    return %arg0, %c0_i32 : i32, i32
  }
  func.func @transform_1(%arg0: i32) -> (i32, i32) {
    %c0_i32 = arith.constant 0 : i32
    %c0_i32_0 = arith.constant 0 : i32
    %c0_i32_1 = arith.constant 0 : i32
    return %c0_i32, %c0_i32_0 : i32, i32
  }
  func.func @transform_2(%arg0: i32) -> (i32, i32) {
    %c0_i32 = arith.constant 0 : i32
    %c0_i32_0 = arith.constant 0 : i32
    %c0_i32_1 = arith.constant 0 : i32
    return %c0_i32, %c0_i32_0 : i32, i32
  }
  func.func @transform_3(%arg0: i32) -> (i32, i32) {
    %c0_i32 = arith.constant 0 : i32
    %c0_i32_0 = arith.constant 0 : i32
    %c0_i32_1 = arith.constant 0 : i32
    return %c0_i32, %c0_i32_0 : i32, i32
  }
  func.func @transform_4(%arg0: i32) -> (i32, i32) {
    %c0_i32 = arith.constant 0 : i32
    %c0_i32_0 = arith.constant 0 : i32
    %c0_i32_1 = arith.constant 0 : i32
    return %c0_i32, %c0_i32_0 : i32, i32
  }
  func.func @transform_5(%arg0: i32) -> (i32, i32) {
    %c0_i32 = arith.constant 0 : i32
    %c0_i32_0 = arith.constant 0 : i32
    %c0_i32_1 = arith.constant 0 : i32
    return %c0_i32, %c0_i32_0 : i32, i32
  }
  func.func @transform_6(%arg0: i32) -> (i32, i32) {
    %c0_i32 = arith.constant 0 : i32
    %c0_i32_0 = arith.constant 0 : i32
    %c0_i32_1 = arith.constant 0 : i32
    return %c0_i32, %c0_i32_0 : i32, i32
  }
  func.func @transform_7(%arg0: i32) -> (i32, i32) {
    %c0_i32 = arith.constant 0 : i32
    %c0_i32_0 = arith.constant 0 : i32
    return %arg0, %c0_i32 : i32, i32
  }
}

</mosaic_0001>

<bundles_post_ra>
// kernel: _mlp_forward_impl.1
= control target key start
LH: loop header
LB: loop body
LE: loop exit
PB: predicated region body
PF: predicated region fallthrough
CT: control target
= control target key end

     0   :  { %vm35_vm0 = vcmask 64512   ;;  %v468_v0 = vmov 0.0   ;;  %vm469_vm1 = vmmov 0   ;;  %v470_v4 = vmov 0.0|0.0   ;;  %s641_s1 = inlined_call_operand.vmem [shape: f32[8,128], index: 1, kind: input, shape index: {}]   ;;  %s642_s0 = inlined_call_operand.vmem [shape: f32[8,8], index: 0, kind: input, shape index: {}]   ;;  %s643_s3 = inlined_call_operand.vmem [shape: f32[128,128], index: 3, kind: input, shape index: {}]   ;;  %s644_s5 = inlined_call_operand.vmem [shape: f32[128,128], index: 5, kind: input, shape index: {}]   ;;  %s645_s2 = inlined_call_operand.vmem [shape: f32[1,128], index: 2, kind: input, shape index: {}]   ;;  %s646_s4 = inlined_call_operand.vmem [shape: f32[1,128], index: 4, kind: input, shape index: {}]   ;;  %s647_s6 = inlined_call_operand.vmem [shape: f32[1,128], index: 6, kind: input, shape index: {}]   ;;  %s648_s7 = inlined_call_operand.vmem [shape: f32[8,128], index: 7, kind: output, shape index: {}]  }
   0x1   :  { %342 = vmatprep.subr.mxu0 %v468_v0  ;;  %v27_v1 = vld [vmem:[%s641_s1] sm:$0xff]  ;;  %344 = vmatprep.mubr.msk.f32.mxu0 %vm469_vm1, %v468_v0  ;;  %v111_v5 = vld [vmem:[%s643_s3 + $0x8] sm:$0xff]  ;;  %v112_v6 = vld [vmem:[%s643_s3 + $0x10] sm:$0xff] }
   0x2   :  { %v26_v2 = vld [vmem:[%s642_s0] sm:$0xff]  ;;  %343 = vmatpush3.msra.mxu0 %v27_v1  ;;  %417 = vmatprep.subr.bf16.mxu1 %v470_v4  ;;  %v113_v7 = vld [vmem:[%s643_s3 + $0x18] sm:$0xff]  ;;  %v115_v11 = vld [vmem:[%s643_s3 + $0x28] sm:$0xff] }
   0x3   :  { %v110_v3 = vld [vmem:[%s643_s3] sm:$0xff]  ;;  %345 = vmatmul.mubr.msk.f32.vlgmr.msra.gmra.mrb[0].mxu0 %vm35_vm0, %v26_v2  ;;  %379 = vmatprep.mubr.msk.f32.mxu1 %vm469_vm1, %v468_v0  ;;  %v421_v9 = vpack.c.bf16 %v113_v7, %v112_v6  ;;  %v116_v13 = vld [vmem:[%s643_s3 + $0x30] sm:$0xff]  ;;  %v117_v14 = vld [vmem:[%s643_s3 + $0x38] sm:$0xff] }
   0x4   :  { %v418_v8 = vpack.c.bf16 %v111_v5, %v110_v3  ;;  %441 = vmatprep.subr.bf16.mxu0 %v470_v4  ;;  %414 = vmatprep.mubr.msk.f32.mxu0 %vm469_vm1, %v468_v0  ;;  %v114_v10 = vld [vmem:[%s643_s3 + $0x20] sm:$0xff]  ;;  %v427_v15 = vpack.c.bf16 %v117_v14, %v116_v13  ;;  %v119_v17 = vld [vmem:[%s643_s3 + $0x48] sm:$0xff]  ;;  %v120_v19 = vld [vmem:[%s643_s3 + $0x50] sm:$0xff] }
   0x5   :  { %v424_v12 = vpack.c.bf16 %v115_v11, %v114_v10  ;;  %v118_v16 = vld [vmem:[%s643_s3 + $0x40] sm:$0xff]  ;;  %v121_v20 = vld [vmem:[%s643_s3 + $0x58] sm:$0xff]  ;;  %v123_v23 = vld [vmem:[%s643_s3 + $0x68] sm:$0xff] }
   0x6   :  { %419 = vmatpush3.bf16.msra.mxu1 %v418_v8  ;;  %v430_v18 = vpack.c.bf16 %v119_v17, %v118_v16  ;;  %v433_v21 = vpack.c.bf16 %v121_v20, %v120_v19  ;;  %v122_v22 = vld [vmem:[%s643_s3 + $0x60] sm:$0xff]  ;;  %v124_v25 = vld [vmem:[%s643_s3 + $0x70] sm:$0xff]  ;;  %v125_v26 = vld [vmem:[%s643_s3 + $0x78] sm:$0xff] }
   0x7   :  { %420 = vmatprep.subr.bf16.mxu1 %v470_v4  ;;  %v436_v24 = vpack.c.bf16 %v123_v23, %v122_v22  ;;  %v439_v27 = vpack.c.bf16 %v125_v26, %v124_v25  ;;  %v204_v28 = vld [vmem:[%s644_s5] sm:$0xff]  ;;  %v205_v29 = vld [vmem:[%s644_s5 + $0x8] sm:$0xff]  ;;  %v206_v30 = vld [vmem:[%s644_s5 + $0x10] sm:$0xff] }
   0x8   :  { %v442_v31 = vpack.c.bf16 %v205_v29, %v204_v28  ;;  %v207_v32 = vld [vmem:[%s644_s5 + $0x18] sm:$0xff]  ;;  %v208_v34 = vld [vmem:[%s644_s5 + $0x20] sm:$0xff]  ;;  %v209_v35 = vld [vmem:[%s644_s5 + $0x28] sm:$0xff] }
   0x9   :  { %v445_v33 = vpack.c.bf16 %v207_v32, %v206_v30  ;;  %v448_v36 = vpack.c.bf16 %v209_v35, %v208_v34  ;;  %v210_v37 = vld [vmem:[%s644_s5 + $0x30] sm:$0xff]  ;;  %v211_v38 = vld [vmem:[%s644_s5 + $0x38] sm:$0xff]  ;;  %v212_v40 = vld [vmem:[%s644_s5 + $0x40] sm:$0xff] }
   0xa   :  { %422 = vmatpush3.bf16.msra.mxu1 %v421_v9  ;;  %443 = vmatpush3.bf16.msra.mxu0 %v442_v31  ;;  %v451_v39 = vpack.c.bf16 %v211_v38, %v210_v37  ;;  %v213_v41 = vld [vmem:[%s644_s5 + $0x48] sm:$0xff]  ;;  %v214_v43 = vld [vmem:[%s644_s5 + $0x50] sm:$0xff]  ;;  %v215_v44 = vld [vmem:[%s644_s5 + $0x58] sm:$0xff] }
   0xb   :  { %423 = vmatprep.subr.bf16.mxu1 %v470_v4  ;;  %444 = vmatprep.subr.bf16.mxu0 %v470_v4  ;;  %v454_v42 = vpack.c.bf16 %v213_v41, %v212_v40  ;;  %v457_v45 = vpack.c.bf16 %v215_v44, %v214_v43  ;;  %v216_v46 = vld [vmem:[%s644_s5 + $0x60] sm:$0xff]  ;;  %v217_v47 = vld [vmem:[%s644_s5 + $0x68] sm:$0xff]  ;;  %v218_v54 = vld [vmem:[%s644_s5 + $0x70] sm:$0xff] }
   0xc   :  { %v460_v48 = vpack.c.bf16 %v217_v47, %v216_v46  ;;  %v302_v49 = vld [vmem:[%s645_s2] ss:$0 sm:$0xff]  ;;  %v219_v55 = vld [vmem:[%s644_s5 + $0x78] sm:$0xff] }
   0xd   :  { %v463_v56 = vpack.c.bf16 %v219_v55, %v218_v54  ;;  %v304_v57 = vld [vmem:[%s646_s4] ss:$0 sm:$0xff] }
   0xe   :  { %425 = vmatpush3.bf16.msra.mxu1 %v424_v12  ;;  %446 = vmatpush3.bf16.msra.mxu0 %v445_v33  ;;  %v305_v62 = vld [vmem:[%s647_s6] ss:$0 sm:$0xff] }
   0xf   :  { %426 = vmatprep.subr.bf16.mxu1 %v470_v4  ;;  %447 = vmatprep.subr.bf16.mxu0 %v470_v4 }
  0x12   :  { %428 = vmatpush3.bf16.msra.mxu1 %v427_v15  ;;  %449 = vmatpush3.bf16.msra.mxu0 %v448_v36 }
  0x13   :  { %429 = vmatprep.subr.bf16.mxu1 %v470_v4  ;;  %450 = vmatprep.subr.bf16.mxu0 %v470_v4 }
  0x16   :  { %431 = vmatpush3.bf16.msra.mxu1 %v430_v18  ;;  %452 = vmatpush3.bf16.msra.mxu0 %v451_v39 }
  0x17   :  { %432 = vmatprep.subr.bf16.mxu1 %v470_v4  ;;  %453 = vmatprep.subr.bf16.mxu0 %v470_v4 }
  0x1a   :  { %434 = vmatpush3.bf16.msra.mxu1 %v433_v21  ;;  %455 = vmatpush3.bf16.msra.mxu0 %v454_v42 }
  0x1b   :  { %435 = vmatprep.subr.bf16.mxu1 %v470_v4  ;;  %456 = vmatprep.subr.bf16.mxu0 %v470_v4 }
  0x1e   :  { %437 = vmatpush3.bf16.msra.mxu1 %v436_v24  ;;  %458 = vmatpush3.bf16.msra.mxu0 %v457_v45 }
  0x1f   :  { %438 = vmatprep.subr.bf16.mxu1 %v470_v4  ;;  %459 = vmatprep.subr.bf16.mxu0 %v470_v4 }
  0x22   :  { %440 = vmatpush3.bf16.msra.mxu1 %v439_v27  ;;  %461 = vmatpush3.bf16.msra.mxu0 %v460_v48 }
  0x23   :  { %462 = vmatprep.subr.bf16.mxu0 %v470_v4 }
  0x26   :  { %464 = vmatpush3.bf16.msra.mxu0 %v463_v56 }
  0xd6   :  { %v105_v50 = vpop.f32.mrb[0].mxu0 }
  0xd7   :  { %v106_v51 = vadd.f32 %v302_v49, %v105_v50  ;;  %v346_v52 = vpop.f32.mrb[1].mxu0 }
  0xd9   :  { %v109_v53 = vmax.f32 %v106_v51, 0.0 }
  0xdb   :  { %380 = vmatmul.mubr.f32.vlgmr.msra.gmra.mrb[0].mxu1 %v109_v53 }
 0x1ae   :  { %v199_v58 = vpop.f32.mrb[0].mxu1 }
 0x1af   :  { %v200_v59 = vadd.f32 %v304_v57, %v199_v58  ;;  %v381_v60 = vpop.f32.mrb[1].mxu1 }
 0x1b1   :  { %v203_v61 = vmax.f32 %v200_v59, 0.0 }
 0x1b3   :  { %415 = vmatmul.mubr.f32.vlgmr.msra.gmra.mrb[2].mxu0 %v203_v61 }
 0x286   :  { %v293_v63 = vpop.f32.mrb[2].mxu0 }
 0x287   :  { %v294_v0 = vadd.f32 %v305_v62, %v293_v63  ;;  %v416_v1 = vpop.f32.mrb[3].mxu0 }
 0x289   :  { %297 = vst [vmem:[%s648_s7] sm:$0xff] %v294_v0 }

// kernel: _mlp_forward_impl.1
= control target key start
LH: loop header
LB: loop body
LE: loop exit
PB: predicated region body
PF: predicated region fallthrough
CT: control target
= control target key end

     0   :  { %vm35_vm0 = vcmask 64512   ;;  %v468_v0 = vmov 0.0   ;;  %vm469_vm1 = vmmov 0   ;;  %v470_v4 = vmov 0.0|0.0   ;;  %s641_s1 = inlined_call_operand.vmem [shape: f32[8,128], index: 1, kind: input, shape index: {}]   ;;  %s642_s0 = inlined_call_operand.vmem [shape: f32[8,8], index: 0, kind: input, shape index: {}]   ;;  %s643_s3 = inlined_call_operand.vmem [shape: f32[128,128], index: 3, kind: input, shape index: {}]   ;;  %s644_s5 = inlined_call_operand.vmem [shape: f32[128,128], index: 5, kind: input, shape index: {}]   ;;  %s645_s2 = inlined_call_operand.vmem [shape: f32[1,128], index: 2, kind: input, shape index: {}]   ;;  %s646_s4 = inlined_call_operand.vmem [shape: f32[1,128], index: 4, kind: input, shape index: {}]   ;;  %s647_s6 = inlined_call_operand.vmem [shape: f32[1,128], index: 6, kind: input, shape index: {}]   ;;  %s648_s7 = inlined_call_operand.vmem [shape: f32[8,128], index: 7, kind: output, shape index: {}]  }
   0x1   :  { %342 = vmatprep.subr.mxu0 %v468_v0  ;;  %v27_v1 = vld [vmem:[%s641_s1] sm:$0xff]  ;;  %344 = vmatprep.mubr.msk.f32.mxu0 %vm469_vm1, %v468_v0  ;;  %v111_v5 = vld [vmem:[%s643_s3 + $0x8] sm:$0xff]  ;;  %v112_v6 = vld [vmem:[%s643_s3 + $0x10] sm:$0xff] }
   0x2   :  { %v26_v2 = vld [vmem:[%s642_s0] sm:$0xff]  ;;  %343 = vmatpush3.msra.mxu0 %v27_v1  ;;  %417 = vmatprep.subr.bf16.mxu1 %v470_v4  ;;  %v113_v7 = vld [vmem:[%s643_s3 + $0x18] sm:$0xff]  ;;  %v115_v11 = vld [vmem:[%s643_s3 + $0x28] sm:$0xff] }
   0x3   :  { %v110_v3 = vld [vmem:[%s643_s3] sm:$0xff]  ;;  %345 = vmatmul.mubr.msk.f32.vlgmr.msra.gmra.mrb[0].mxu0 %vm35_vm0, %v26_v2  ;;  %379 = vmatprep.mubr.msk.f32.mxu1 %vm469_vm1, %v468_v0  ;;  %v421_v9 = vpack.c.bf16 %v113_v7, %v112_v6  ;;  %v116_v13 = vld [vmem:[%s643_s3 + $0x30] sm:$0xff]  ;;  %v117_v14 = vld [vmem:[%s643_s3 + $0x38] sm:$0xff] }
   0x4   :  { %v418_v8 = vpack.c.bf16 %v111_v5, %v110_v3  ;;  %441 = vmatprep.subr.bf16.mxu0 %v470_v4  ;;  %414 = vmatprep.mubr.msk.f32.mxu0 %vm469_vm1, %v468_v0  ;;  %v114_v10 = vld [vmem:[%s643_s3 + $0x20] sm:$0xff]  ;;  %v427_v15 = vpack.c.bf16 %v117_v14, %v116_v13  ;;  %v119_v17 = vld [vmem:[%s643_s3 + $0x48] sm:$0xff]  ;;  %v120_v19 = vld [vmem:[%s643_s3 + $0x50] sm:$0xff] }
   0x5   :  { %v424_v12 = vpack.c.bf16 %v115_v11, %v114_v10  ;;  %v118_v16 = vld [vmem:[%s643_s3 + $0x40] sm:$0xff]  ;;  %v121_v20 = vld [vmem:[%s643_s3 + $0x58] sm:$0xff]  ;;  %v123_v23 = vld [vmem:[%s643_s3 + $0x68] sm:$0xff] }
   0x6   :  { %419 = vmatpush3.bf16.msra.mxu1 %v418_v8  ;;  %v430_v18 = vpack.c.bf16 %v119_v17, %v118_v16  ;;  %v433_v21 = vpack.c.bf16 %v121_v20, %v120_v19  ;;  %v122_v22 = vld [vmem:[%s643_s3 + $0x60] sm:$0xff]  ;;  %v124_v25 = vld [vmem:[%s643_s3 + $0x70] sm:$0xff]  ;;  %v125_v26 = vld [vmem:[%s643_s3 + $0x78] sm:$0xff] }
   0x7   :  { %420 = vmatprep.subr.bf16.mxu1 %v470_v4  ;;  %v436_v24 = vpack.c.bf16 %v123_v23, %v122_v22  ;;  %v439_v27 = vpack.c.bf16 %v125_v26, %v124_v25  ;;  %v204_v28 = vld [vmem:[%s644_s5] sm:$0xff]  ;;  %v205_v29 = vld [vmem:[%s644_s5 + $0x8] sm:$0xff]  ;;  %v206_v30 = vld [vmem:[%s644_s5 + $0x10] sm:$0xff] }
   0x8   :  { %v442_v31 = vpack.c.bf16 %v205_v29, %v204_v28  ;;  %v207_v32 = vld [vmem:[%s644_s5 + $0x18] sm:$0xff]  ;;  %v208_v34 = vld [vmem:[%s644_s5 + $0x20] sm:$0xff]  ;;  %v209_v35 = vld [vmem:[%s644_s5 + $0x28] sm:$0xff] }
   0x9   :  { %v445_v33 = vpack.c.bf16 %v207_v32, %v206_v30  ;;  %v448_v36 = vpack.c.bf16 %v209_v35, %v208_v34  ;;  %v210_v37 = vld [vmem:[%s644_s5 + $0x30] sm:$0xff]  ;;  %v211_v38 = vld [vmem:[%s644_s5 + $0x38] sm:$0xff]  ;;  %v212_v40 = vld [vmem:[%s644_s5 + $0x40] sm:$0xff] }
   0xa   :  { %422 = vmatpush3.bf16.msra.mxu1 %v421_v9  ;;  %443 = vmatpush3.bf16.msra.mxu0 %v442_v31  ;;  %v451_v39 = vpack.c.bf16 %v211_v38, %v210_v37  ;;  %v213_v41 = vld [vmem:[%s644_s5 + $0x48] sm:$0xff]  ;;  %v214_v43 = vld [vmem:[%s644_s5 + $0x50] sm:$0xff]  ;;  %v215_v44 = vld [vmem:[%s644_s5 + $0x58] sm:$0xff] }
   0xb   :  { %423 = vmatprep.subr.bf16.mxu1 %v470_v4  ;;  %444 = vmatprep.subr.bf16.mxu0 %v470_v4  ;;  %v454_v42 = vpack.c.bf16 %v213_v41, %v212_v40  ;;  %v457_v45 = vpack.c.bf16 %v215_v44, %v214_v43  ;;  %v216_v46 = vld [vmem:[%s644_s5 + $0x60] sm:$0xff]  ;;  %v217_v47 = vld [vmem:[%s644_s5 + $0x68] sm:$0xff]  ;;  %v218_v54 = vld [vmem:[%s644_s5 + $0x70] sm:$0xff] }
   0xc   :  { %v460_v48 = vpack.c.bf16 %v217_v47, %v216_v46  ;;  %v302_v49 = vld [vmem:[%s645_s2] ss:$0 sm:$0xff]  ;;  %v219_v55 = vld [vmem:[%s644_s5 + $0x78] sm:$0xff] }
   0xd   :  { %v463_v56 = vpack.c.bf16 %v219_v55, %v218_v54  ;;  %v304_v57 = vld [vmem:[%s646_s4] ss:$0 sm:$0xff] }
   0xe   :  { %425 = vmatpush3.bf16.msra.mxu1 %v424_v12  ;;  %446 = vmatpush3.bf16.msra.mxu0 %v445_v33  ;;  %v305_v62 = vld [vmem:[%s647_s6] ss:$0 sm:$0xff] }
   0xf   :  { %426 = vmatprep.subr.bf16.mxu1 %v470_v4  ;;  %447 = vmatprep.subr.bf16.mxu0 %v470_v4 }
  0x12   :  { %428 = vmatpush3.bf16.msra.mxu1 %v427_v15  ;;  %449 = vmatpush3.bf16.msra.mxu0 %v448_v36 }
  0x13   :  { %429 = vmatprep.subr.bf16.mxu1 %v470_v4  ;;  %450 = vmatprep.subr.bf16.mxu0 %v470_v4 }
  0x16   :  { %431 = vmatpush3.bf16.msra.mxu1 %v430_v18  ;;  %452 = vmatpush3.bf16.msra.mxu0 %v451_v39 }
  0x17   :  { %432 = vmatprep.subr.bf16.mxu1 %v470_v4  ;;  %453 = vmatprep.subr.bf16.mxu0 %v470_v4 }
  0x1a   :  { %434 = vmatpush3.bf16.msra.mxu1 %v433_v21  ;;  %455 = vmatpush3.bf16.msra.mxu0 %v454_v42 }
  0x1b   :  { %435 = vmatprep.subr.bf16.mxu1 %v470_v4  ;;  %456 = vmatprep.subr.bf16.mxu0 %v470_v4 }
  0x1e   :  { %437 = vmatpush3.bf16.msra.mxu1 %v436_v24  ;;  %458 = vmatpush3.bf16.msra.mxu0 %v457_v45 }
  0x1f   :  { %438 = vmatprep.subr.bf16.mxu1 %v470_v4  ;;  %459 = vmatprep.subr.bf16.mxu0 %v470_v4 }
  0x22   :  { %440 = vmatpush3.bf16.msra.mxu1 %v439_v27  ;;  %461 = vmatpush3.bf16.msra.mxu0 %v460_v48 }
  0x23   :  { %462 = vmatprep.subr.bf16.mxu0 %v470_v4 }
  0x26   :  { %464 = vmatpush3.bf16.msra.mxu0 %v463_v56 }
  0xd6   :  { %v105_v50 = vpop.f32.mrb[0].mxu0 }
  0xd7   :  { %v106_v51 = vadd.f32 %v302_v49, %v105_v50  ;;  %v346_v52 = vpop.f32.mrb[1].mxu0 }
  0xd9   :  { %v109_v53 = vmax.f32 %v106_v51, 0.0 }
  0xdb   :  { %380 = vmatmul.mubr.f32.vlgmr.msra.gmra.mrb[0].mxu1 %v109_v53 }
 0x1ae   :  { %v199_v58 = vpop.f32.mrb[0].mxu1 }
 0x1af   :  { %v200_v59 = vadd.f32 %v304_v57, %v199_v58  ;;  %v381_v60 = vpop.f32.mrb[1].mxu1 }
 0x1b1   :  { %v203_v61 = vmax.f32 %v200_v59, 0.0 }
 0x1b3   :  { %415 = vmatmul.mubr.f32.vlgmr.msra.gmra.mrb[2].mxu0 %v203_v61 }
 0x286   :  { %v293_v63 = vpop.f32.mrb[2].mxu0 }
 0x287   :  { %v294_v0 = vadd.f32 %v305_v62, %v293_v63  ;;  %v416_v1 = vpop.f32.mrb[3].mxu0 }
 0x289   :  { %297 = vst [vmem:[%s648_s7] sm:$0xff] %v294_v0 }

</bundles_post_ra>
